<compile_context>
chip_gen: v7x
topology: tpu7x:2x2x1
jax: 0.10.0
libtpu: 0.0.40
codegen_flags: <defaults>
</compile_context>

<pallas_src>
import jax
import jax.numpy as jnp
from jax.experimental import pallas as pl
from jax.experimental.pallas import tpu as pltpu

STATE_DIM = 4
HIDDEN = 64
NUM_ACTIONS = 5

TILE_B = 4096        # batch tile cap (multiple of 8); footprint is tiny now
ROW_CHUNK = 256      # in-kernel row chunk: keeps h1/h2 in vregs at large tiles

# Packed "body" slab (rows aligned to multiples of 8):
#   rows 0:4    -> w1 (4, 64)
#   row  8      -> b1 (64,)
#   rows 16:80  -> w2 (64, 64)
#   row  80     -> b2 (64,)
B1_ROW = 8
W2_ROW = 16
B2_ROW = 80
BODY_ROWS = 88

# Packed "head" slab (fused pi|v head), 8 lanes wide:
#   rows 0:64, cols 0:5 -> wpi ; rows 0:64, col 5 -> wv ; cols 6:7 zero
#   row  64,   cols 0:5 -> bpi ; row 64,   col 5 -> bv
HEAD_LANES = 8
HEAD_ROWS = HIDDEN + 8   # 72


def actor_critic_kernel(x_ref, body_ref, head_ref, pi_ref, v_ref):
    # Static slices of the resident parameter slabs.
    w1 = body_ref[0:STATE_DIM, :]                    # (4, 64)
    b1 = body_ref[B1_ROW:B1_ROW + 1, :]              # (1, 64)
    w2 = body_ref[W2_ROW:W2_ROW + HIDDEN, :]         # (64, 64)
    b2 = body_ref[B2_ROW:B2_ROW + 1, :]              # (1, 64)
    wh = head_ref[0:HIDDEN, :]                       # (64, 8)  fused pi|v
    bh = head_ref[HIDDEN:HIDDEN + 1, :]              # (1, 8)

    tb = x_ref.shape[0]
    chunk = min(ROW_CHUNK, tb)
    n_full, rem = divmod(tb, chunk)                  # static ints

    def do_rows(r, size):
        x = x_ref[pl.ds(r, size), :]                 # (size, 4)
        h1 = jnp.maximum(
            jnp.dot(x, w1, preferred_element_type=jnp.float32) + b1, 0.0)
        h2 = jnp.maximum(
            jnp.dot(h1, w2, preferred_element_type=jnp.float32) + b2, 0.0)
        z = jnp.dot(h2, wh, preferred_element_type=jnp.float32) + bh  # (size, 8)
        pi_ref[pl.ds(r, size), :] = z[:, :NUM_ACTIONS]
        v_ref[pl.ds(r, size), :] = z[:, NUM_ACTIONS:NUM_ACTIONS + 1]

    if n_full == 1 and rem == 0:
        # Small tile: single pass, no loop machinery.
        do_rows(0, tb)
    else:
        def body_fn(c, carry):
            do_rows(pl.multiple_of(c * chunk, chunk), chunk)
            return carry
        jax.lax.fori_loop(0, n_full, body_fn, None, unroll=True)
        if rem:
            do_rows(n_full * chunk, rem)             # rem is a multiple of 8


def _round_up(n, m):
    return ((n + m - 1) // m) * m


def _choose_tile(B, tile_cap):
    """Batch tile: multiple of 8, capped, and for large batches kept small
    enough that the grid has >= 2 steps (so v7x megacore sharding engages)."""
    b8 = _round_up(B, 8)
    half = _round_up(-(-b8 // 2), 8)
    return max(8, min(tile_cap, half))


def actor_critic_forward(x, packed_params, *, tile_b=TILE_B):
    """x: (B, STATE_DIM) f32 -> (pi_logits (B, NUM_ACTIONS), v (B, 1))."""
    body, head = packed_params
    B = x.shape[0]
    tb = _choose_tile(B, tile_b)
    B_pad = _round_up(B, tb)
    if B_pad != B:
        # Padded rows produce meaningless (bias-propagated) outputs; they are
        # sliced away below and must never be consumed downstream.
        x = jnp.pad(x, ((0, B_pad - B), (0, 0)))
    grid = (B_pad // tb,)

    flops = 2 * B_pad * (STATE_DIM * HIDDEN + HIDDEN * HIDDEN + HIDDEN * HEAD_LANES)
    bytes_accessed = 4 * (B_pad * (STATE_DIM + NUM_ACTIONS + 1)
                          + body.size + head.size)

    pi_pad, v_pad = pl.pallas_call(
        actor_critic_kernel,
        out_shape=(
            jax.ShapeDtypeStruct((B_pad, NUM_ACTIONS), jnp.float32),
            jax.ShapeDtypeStruct((B_pad, 1), jnp.float32),
        ),
        grid=grid,
        in_specs=[
            # batch-tiled activations
            pl.BlockSpec((tb, STATE_DIM), lambda i: (i, 0)),
            # parameter slabs: constant index_map -> resident across grid steps
            pl.BlockSpec((BODY_ROWS, HIDDEN), lambda i: (0, 0)),
            pl.BlockSpec((HEAD_ROWS, HEAD_LANES), lambda i: (0, 0)),
        ],
        out_specs=(
            pl.BlockSpec((tb, NUM_ACTIONS), lambda i: (i, 0)),
            pl.BlockSpec((tb, 1), lambda i: (i, 0)),
        ),
        compiler_params=pltpu.CompilerParams(
            dimension_semantics=("parallel",)),      # shard batch over TCs (v7x)
        cost_estimate=pl.CostEstimate(
            flops=flops, transcendentals=0, bytes_accessed=bytes_accessed),
    )(x, body, head)

    if B_pad != B:
        pi_pad = pi_pad[:B]
        v_pad = v_pad[:B]
    return pi_pad, v_pad


def init_params(key):
    """PyTorch Linear default init: U(-1/sqrt(fan_in), 1/sqrt(fan_in)).
    Weights stored as (in, out) = W.T relative to PyTorch."""
    def linear(k, fan_in, fan_out):
        kw, kb = jax.random.split(k)
        bound = 1.0 / jnp.sqrt(float(fan_in))
        w = jax.random.uniform(kw, (fan_in, fan_out), jnp.float32, -bound, bound)
        b = jax.random.uniform(kb, (1, fan_out), jnp.float32, -bound, bound)
        return w, b

    k1, k2, k3, k4 = jax.random.split(key, 4)
    w1, b1 = linear(k1, STATE_DIM, HIDDEN)
    w2, b2 = linear(k2, HIDDEN, HIDDEN)
    wpi, bpi = linear(k3, HIDDEN, NUM_ACTIONS)
    wv, bv = linear(k4, HIDDEN, 1)
    return (w1, b1, w2, b2, wpi, bpi, wv, bv)


def pack_params(params):
    """Pack the 8 per-layer tensors into 2 sublane/lane-aligned VMEM slabs.
    All updates use slice-form .at[...] with exactly matching shapes."""
    w1, b1, w2, b2, wpi, bpi, wv, bv = params
    body = jnp.zeros((BODY_ROWS, HIDDEN), jnp.float32)
    body = body.at[0:STATE_DIM, :].set(w1)                     # (4, 64)
    body = body.at[B1_ROW:B1_ROW + 1, :].set(b1)               # (1, 64)
    body = body.at[W2_ROW:W2_ROW + HIDDEN, :].set(w2)          # (64, 64)
    body = body.at[B2_ROW:B2_ROW + 1, :].set(b2)               # (1, 64)

    head = jnp.zeros((HEAD_ROWS, HEAD_LANES), jnp.float32)
    head = head.at[0:HIDDEN, 0:NUM_ACTIONS].set(wpi)                           # (64, 5)
    head = head.at[0:HIDDEN, NUM_ACTIONS:NUM_ACTIONS + 1].set(wv)              # (64, 1)
    head = head.at[HIDDEN:HIDDEN + 1, 0:NUM_ACTIONS].set(bpi)                  # (1, 5)
    head = head.at[HIDDEN:HIDDEN + 1, NUM_ACTIONS:NUM_ACTIONS + 1].set(bv)     # (1, 1)
    return body, head


def reference_forward(x, params):
    w1, b1, w2, b2, wpi, bpi, wv, bv = params
    h = jnp.maximum(x @ w1 + b1, 0.0)
    h = jnp.maximum(h @ w2 + b2, 0.0)
    return h @ wpi + bpi, h @ wv + bv


if __name__ == "__main__":
    key = jax.random.PRNGKey(0)
    kx, kp, kx2 = jax.random.split(key, 3)

    params = init_params(kp)
    packed = pack_params(params)

    # Small demo batch (single grid step, direct no-loop path).
    B = 8
    x = jax.random.normal(kx, (B, STATE_DIM), jnp.float32)
    pi_logits, v = jax.block_until_ready(actor_critic_forward(x, packed))

    pi_ref, v_ref = reference_forward(x, params)
    assert pi_logits.shape == (B, NUM_ACTIONS)
    assert v.shape == (B, 1)
    assert jnp.allclose(pi_logits, pi_ref, atol=1e-5, rtol=1e-5)
    assert jnp.allclose(v, v_ref, atol=1e-5, rtol=1e-5)

    # Larger batch: exercises tile clamping for >=2 grid steps (tb=600, grid=2)
    # and the in-kernel row-chunk loop (2 full 256-row chunks + 88 remainder).
    B2 = 1200
    x2 = jax.random.normal(kx2, (B2, STATE_DIM), jnp.float32)
    pi2, v2 = jax.block_until_ready(actor_critic_forward(x2, packed))
    pi2_ref, v2_ref = reference_forward(x2, params)
    assert pi2.shape == (B2, NUM_ACTIONS)
    assert v2.shape == (B2, 1)
    assert jnp.allclose(pi2, pi2_ref, atol=1e-4, rtol=1e-5)
    assert jnp.allclose(v2, v2_ref, atol=1e-4, rtol=1e-5)

    print("KERNEL_OK")
</pallas_src>

<mosaic_0001>
module attributes {stable_mosaic.version = 11 : i64} {
  func.func @actor_critic_kernel(%arg0: i32, %arg1: memref<8x4xf32, #tpu.memory_space<vmem>>, %arg2: memref<88x64xf32, #tpu.memory_space<vmem>>, %arg3: memref<72x8xf32, #tpu.memory_space<vmem>>, %arg4: memref<8x5xf32, #tpu.memory_space<vmem>>, %arg5: memref<8x1xf32, #tpu.memory_space<vmem>>) attributes {dimension_semantics = [#tpu.dimension_semantics<parallel>], iteration_bounds = array<i64: 1>, scalar_prefetch = 0 : i64, scratch_operands = 0 : i64, tpu.core_type = #tpu.core_type<tc>, window_params = [{transform_indices = @transform_0, window_bounds = array<i64: 8, 4>}, {pipeline_mode = #tpu.pipeline_mode<synchronous>, transform_indices = @transform_1, window_bounds = array<i64: 88, 64>}, {pipeline_mode = #tpu.pipeline_mode<synchronous>, transform_indices = @transform_2, window_bounds = array<i64: 72, 8>}, {transform_indices = @transform_3, window_bounds = array<i64: 8, 5>}, {transform_indices = @transform_4, window_bounds = array<i64: 8, 1>}]} {
    %c0 = arith.constant 0 : index
    %c0_0 = arith.constant 0 : index
    %0 = vector.load %arg2[%c0, %c0_0] : memref<88x64xf32, #tpu.memory_space<vmem>>, vector<4x64xf32>
    %c8 = arith.constant 8 : index
    %c0_1 = arith.constant 0 : index
    %1 = vector.load %arg2[%c8, %c0_1] : memref<88x64xf32, #tpu.memory_space<vmem>>, vector<1x64xf32>
    %c16 = arith.constant 16 : index
    %c0_2 = arith.constant 0 : index
    %2 = vector.load %arg2[%c16, %c0_2] : memref<88x64xf32, #tpu.memory_space<vmem>>, vector<64x64xf32>
    %c80 = arith.constant 80 : index
    %c0_3 = arith.constant 0 : index
    %3 = vector.load %arg2[%c80, %c0_3] : memref<88x64xf32, #tpu.memory_space<vmem>>, vector<1x64xf32>
    %c0_4 = arith.constant 0 : index
    %c0_5 = arith.constant 0 : index
    %4 = vector.load %arg3[%c0_4, %c0_5] : memref<72x8xf32, #tpu.memory_space<vmem>>, vector<64x8xf32>
    %c64 = arith.constant 64 : index
    %c0_6 = arith.constant 0 : index
    %5 = vector.load %arg3[%c64, %c0_6] : memref<72x8xf32, #tpu.memory_space<vmem>>, vector<1x8xf32>
    %c0_7 = arith.constant 0 : index
    %c0_8 = arith.constant 0 : index
    %6 = vector.load %arg1[%c0_7, %c0_8] : memref<8x4xf32, #tpu.memory_space<vmem>>, vector<8x4xf32>
    %cst = arith.constant dense<0.000000e+00> : vector<8x64xf32>
    %7 = tpu.matmul %6, %0, %cst {dimension_numbers = #tpu.dot_dimension_numbers<[1], [0], [0], [1], [0, 0, 1, 1], [], []>} : vector<8x4xf32>, vector<4x64xf32>, vector<8x64xf32> -> vector<8x64xf32>
    %8 = vector.broadcast %1 : vector<1x64xf32> to vector<8x64xf32>
    %9 = arith.addf %7, %8 : vector<8x64xf32>
    %cst_9 = arith.constant 0.000000e+00 : f32
    %10 = vector.broadcast %cst_9 : f32 to vector<8x64xf32>
    %11 = arith.maximumf %9, %10 : vector<8x64xf32>
    %cst_10 = arith.constant dense<0.000000e+00> : vector<8x64xf32>
    %12 = tpu.matmul %11, %2, %cst_10 {dimension_numbers = #tpu.dot_dimension_numbers<[1], [0], [0], [1], [0, 0, 1, 1], [], []>} : vector<8x64xf32>, vector<64x64xf32>, vector<8x64xf32> -> vector<8x64xf32>
    %13 = vector.broadcast %3 : vector<1x64xf32> to vector<8x64xf32>
    %14 = arith.addf %12, %13 : vector<8x64xf32>
    %cst_11 = arith.constant 0.000000e+00 : f32
    %15 = vector.broadcast %cst_11 : f32 to vector<8x64xf32>
    %16 = arith.maximumf %14, %15 : vector<8x64xf32>
    %cst_12 = arith.constant dense<0.000000e+00> : vector<8x8xf32>
    %17 = tpu.matmul %16, %4, %cst_12 {dimension_numbers = #tpu.dot_dimension_numbers<[1], [0], [0], [1], [0, 0, 1, 1], [], []>} : vector<8x64xf32>, vector<64x8xf32>, vector<8x8xf32> -> vector<8x8xf32>
    %18 = vector.broadcast %5 : vector<1x8xf32> to vector<8x8xf32>
    %19 = arith.addf %17, %18 : vector<8x8xf32>
    %20 = vector.extract_strided_slice %19 {offsets = [0, 0], sizes = [8, 5], strides = [1, 1]} : vector<8x8xf32> to vector<8x5xf32>
    %c0_13 = arith.constant 0 : index
    %c0_14 = arith.constant 0 : index
    %21 = vector.load %arg4[%c0_13, %c0_14] : memref<8x5xf32, #tpu.memory_space<vmem>>, vector<8x5xf32>
    tpu.vector_store %arg4[%c0_13, %c0_14], %20 {strides = array<i32>} : memref<8x5xf32, #tpu.memory_space<vmem>>, vector<8x5xf32>,
    %22 = vector.extract_strided_slice %19 {offsets = [0, 5], sizes = [8, 1], strides = [1, 1]} : vector<8x8xf32> to vector<8x1xf32>
    %c0_15 = arith.constant 0 : index
    %c0_16 = arith.constant 0 : index
    %23 = vector.load %arg5[%c0_15, %c0_16] : memref<8x1xf32, #tpu.memory_space<vmem>>, vector<8x1xf32>
    tpu.vector_store %arg5[%c0_15, %c0_16], %22 {strides = array<i32>} : memref<8x1xf32, #tpu.memory_space<vmem>>, vector<8x1xf32>,
    return
  }
  func.func @transform_0(%arg0: i32) -> (i32, i32) {
    %c0_i32 = arith.constant 0 : i32
    %c0_i32_0 = arith.constant 0 : i32
    return %arg0, %c0_i32 : i32, i32
  }
  func.func @transform_1(%arg0: i32) -> (i32, i32) {
    %c0_i32 = arith.constant 0 : i32
    %c0_i32_0 = arith.constant 0 : i32
    %c0_i32_1 = arith.constant 0 : i32
    return %c0_i32, %c0_i32_0 : i32, i32
  }
  func.func @transform_2(%arg0: i32) -> (i32, i32) {
    %c0_i32 = arith.constant 0 : i32
    %c0_i32_0 = arith.constant 0 : i32
    %c0_i32_1 = arith.constant 0 : i32
    return %c0_i32, %c0_i32_0 : i32, i32
  }
  func.func @transform_3(%arg0: i32) -> (i32, i32) {
    %c0_i32 = arith.constant 0 : i32
    %c0_i32_0 = arith.constant 0 : i32
    return %arg0, %c0_i32 : i32, i32
  }
  func.func @transform_4(%arg0: i32) -> (i32, i32) {
    %c0_i32 = arith.constant 0 : i32
    %c0_i32_0 = arith.constant 0 : i32
    return %arg0, %c0_i32 : i32, i32
  }
}

</mosaic_0001>

<bundles_post_ra>
// kernel: tpu_custom_call.1
= control target key start
LH: loop header
LB: loop body
LE: loop exit
PB: predicated region body
PF: predicated region fallthrough
CT: control target
= control target key end

     0   :  { %vm46_vm0 = vcmask 1043456   ;;  %v426_v2 = vmov 0.0   ;;  %vm427_vm1 = vmmov 0   ;;  %vm42_vm2 = vcmask 31744   ;;  %s537_s0 = inlined_call_operand.vmem [shape: f32[8,4], index: 0, kind: input, shape index: {}]   ;;  %s538_s1 = inlined_call_operand.vmem [shape: f32[88,64], index: 1, kind: input, shape index: {}]   ;;  %s539_s2 = inlined_call_operand.vmem [shape: f32[72,8], index: 2, kind: input, shape index: {}]   ;;  %s540_s3 = inlined_call_operand.hbm [shape: f32[8,5], index: 3, kind: output, shape index: {0}]   ;;  %s541_s4 = inlined_call_operand.vmem [shape: f32[8,1], index: 4, kind: output, shape index: {1}]  }
   0x1   :  { %v17_v0 = vld [vmem:[%s538_s1] sm:$0xf]  ;;  %330 = vmatprep.subr.mxu0 %v426_v2  ;;  %332 = vmatprep.mubr.msk.f32.mxu0 %vm427_vm1, %v426_v2  ;;  %v19_v3 = vld [vmem:[%s538_s1 + $0x10] sm:$0xff]  ;;  %v20_v4 = vld [vmem:[%s538_s1 + $0x18] sm:$0xff]  ;;  %v428_v6 = vmov 0.0|0.0  }
   0x2   :  { %v37_v1 = vld [vmem:[%s537_s0] sm:$0xff]  ;;  %331 = vmatpush3.msk.msra.mxu0 %vm46_vm0, %v17_v0  ;;  %373 = vmatprep.subr.bf16.mxu1 %v428_v6  ;;  %v374_v7 = vpack.c.bf16 %v20_v4, %v19_v3  ;;  %v22_v8 = vld [vmem:[%s538_s1 + $0x28] sm:$0xff] }
   0x3   :  { %v21_v5 = vld [vmem:[%s538_s1 + $0x20] sm:$0xff]  ;;  %333 = vmatmul.mubr.msk.f32.vlgmr.msra.gmra.mrb[0].mxu0 %vm42_vm2, %v37_v1  ;;  %351 = vmatprep.mubr.msk.f32.mxu1 %vm427_vm1, %v426_v2 }
   0x4   :  { %10 = vsyncpa [#allocation3], 0  ;;  %375 = vmatpush3.bf16.msra.mxu1 %v374_v7  ;;  %v377_v9 = vpack.c.bf16 %v22_v8, %v21_v5  ;;  %385 = vmatprep.subr.bf16.mxu0 %v428_v6  ;;  %v23_v10 = vld [vmem:[%s538_s1 + $0x30] sm:$0xff]  ;;  %v24_v11 = vld [vmem:[%s538_s1 + $0x38] sm:$0xff]  ;;  %vm125_vm3 = vcmask 523264   ;;  %s429_s29 = smov [#allocation2]  }
   0x5   :  { %376 = vmatprep.subr.bf16.mxu1 %v428_v6  ;;  %370 = vmatprep.mubr.msk.f32.mxu0 %vm427_vm1, %v426_v2  ;;  %v380_v12 = vpack.c.bf16 %v24_v11, %v23_v10  ;;  %v25_v13 = vld [vmem:[%s538_s1 + $0x40] sm:$0xff]  ;;  %v26_v14 = vld [vmem:[%s538_s1 + $0x48] sm:$0xff]  ;;  %v30_v18 = vld [vmem:[%s539_s2 + $0x10] sm:$0xff]  ;;  %s291_s30 = sshll.u32 %s429_s29, 4  ;;  %vm277_vm4 = vcmask 39936   ;;  %s430_s5 = smov 123   ;;  %s292_s30 = int_to_ptr.vmem [resolvable:$true] %s291_s30 }
   0x6   :  { %v383_v15 = vpack.c.bf16 %v26_v14, %v25_v13  ;;  %v28_v16 = vld [vmem:[%s539_s2] sm:$0xff]  ;;  %v29_v17 = vld [vmem:[%s539_s2 + $0x8] sm:$0xff]  ;;  %v31_v20 = vld [vmem:[%s539_s2 + $0x18] sm:$0xff]  ;;  %p407_p1 = scmp.lt.s32.totalorder %s292_s30, %s292_s30 }
   0x7   :  { %v386_v19 = vpack.c.bf16 %v29_v17, %v28_v16  ;;  %v389_v21 = vpack.c.bf16 %v31_v20, %v30_v18  ;;  %v32_v22 = vld [vmem:[%s539_s2 + $0x20] sm:$0xff]  ;;  %v33_v23 = vld [vmem:[%s539_s2 + $0x28] sm:$0xff]  ;;  %v34_v30 = vld [vmem:[%s539_s2 + $0x30] sm:$0xff] }
   0x8   :  { %378 = vmatpush3.bf16.msra.mxu1 %v377_v9  ;;  %v392_v24 = vpack.c.bf16 %v33_v23, %v32_v22  ;;  %v303_v25 = vld [vmem:[%s538_s1 + $0x8] ss:$0 sm:$0xff]  ;;  %v35_v31 = vld [vmem:[%s539_s2 + $0x38] sm:$0xff]  ;;  %v306_v33 = vld [vmem:[%s538_s1 + $0x50] ss:$0 sm:$0xff]  ;;  %s402_s1 = scalar_lea.vmem %s292_s30, 128 }
   0x9   :  { %379 = vmatprep.subr.bf16.mxu1 %v428_v6  ;;  %387 = vmatpush3.bf16.msra.mxu0 %v386_v19  ;;  %v395_v32 = vpack.c.bf16 %v35_v31, %v34_v30  ;;  %v308_v38 = vld [vmem:[%s539_s2 + $0x40] ss:$0 sm:$0xff]  ;;  %p403_p0 = scmp.ne.s32.totalorder %s292_s30, %s402_s1  ;;  %p408_p2 = scmp.lt.s32.totalorder %s402_s1, %s402_s1 }
   0xa   :  { %388 = vmatprep.subr.bf16.mxu0 %v428_v6 }
   0xb   :  { %p409_p3 = por %p408_p2, %p407_p1 }
   0xc   :  { %381 = vmatpush3.bf16.msra.mxu1 %v380_v12 }
   0xd   :  { %382 = vmatprep.subr.bf16.mxu1 %v428_v6  ;;  %390 = vmatpush3.bf16.msra.mxu0 %v389_v21  ;;  %p410_p4 = pnand %p409_p3, %p403_p0 }
   0xe   :  { %391 = vmatprep.subr.bf16.mxu0 %v428_v6 }
  0x10   :  { %384 = vmatpush3.bf16.msra.mxu1 %v383_v15 }
  0x11   :  { %393 = vmatpush3.bf16.msra.mxu0 %v392_v24 }
  0x12   :  { %394 = vmatprep.subr.bf16.mxu0 %v428_v6 }
  0x15   :  { %396 = vmatpush3.bf16.msra.mxu0 %v395_v32 }
  0xd6   :  { %v116_v26 = vpop.f32.mrb[0].mxu0 }
  0xd7   :  { %v117_v27 = vadd.f32 %v303_v25, %v116_v26  ;;  %v334_v28 = vpop.f32.mrb[1].mxu0 }
  0xd9   :  { %v120_v29 = vmax.f32 %v117_v27, 0.0 }
  0xdb   :  { %352 = vmatmul.mubr.msk.f32.vlgmr.msra.gmra.mrb[0].mxu1 %vm125_vm3, %v120_v29 }
 0x1ae   :  { %v195_v34 = vpop.f32.mrb[0].mxu1 }
 0x1af   :  { %v196_v35 = vadd.f32 %v306_v33, %v195_v34  ;;  %v353_v36 = vpop.f32.mrb[1].mxu1 }
 0x1b1   :  { %v199_v37 = vmax.f32 %v196_v35, 0.0 }
 0x1b3   :  { %371 = vmatmul.mubr.msk.f32.vlgmr.msra.gmra.mrb[2].mxu0 %vm125_vm3, %v199_v37 }
 0x286   :  { %v273_v39 = vpop.f32.mrb[2].mxu0 }
 0x287   :  { %v274_v40 = vadd.f32 %v308_v38, %v273_v39  ;;  %v372_v41 = vpop.f32.mrb[3].mxu0 }
 0x289   :  { %280 = vrot.lane.b32.xlu0 %v274_v40, %s430_s5  ;;  %278 = vst.msk [vmem:[#allocation2] sm:$0xff] %vm277_vm4, %v274_v40 }
 0x28a   :  { %413 = shalt.err (!%p410_p4)
}
 0x28b   :  { %s414_s2 = scalar_lea.hbm %s540_s3, 128 }
 0x28c   :  { %p415_p5 = scmp.ne.s32.totalorder %s540_s3, %s414_s2  ;;  %p418_p6 = scmp.lt.u32.totalorder %s414_s2, %s540_s3 }
 0x28e   :  { %p420_p7 = pnand %p418_p6, %p415_p5 }
 0x290   :  { %423 = shalt.err (!%p420_p7)
}
 0x291   :  { %294 = dma.vmem_to_hbm [thread:$0]  %s292_s30, 128, %s540_s3, [#allocation3]   ;;  %vm283_vm5 = vcmask 7168  }
 0x2fb   :  { %v281_v42 = vpop.permute.xlu0 %280 }
 0x2fc   :  { %284 = vst.msk [vmem:[%s541_s4] sm:$0xff] %vm283_vm5, %v281_v42 }
 0x2fd   :  { %424 = dma.done.wait [#allocation3], 128  }
 0x2fe   :  { %425 = vsyncadd [#allocation3], 4294967168 }
 0x2ff   :  { %302 = vsyncpa [#allocation3], 1 }

</bundles_post_ra>
